<compile_context>
chip_gen: v6e
topology: v6e:2x2x1
jax: 0.10.0
libtpu: 0.0.40
codegen_flags: <defaults>
</compile_context>

<pallas_src>
import jax
import jax.numpy as jnp
from jax.experimental import pallas as pl
from jax.experimental.pallas import tpu as pltpu


def _embed_kernel(a_ref, w_ref, pos_ref, o_ref):
    """One (token-tile, batch) output block.

    a_ref:   (tt, K)   activation patches (compute dtype)
    w_ref:   (K, Np)   VMEM-resident projection weight (compute dtype)
    pos_ref: (tt, Np)  f32 position embedding with conv bias folded in
    o_ref:   (tt, Np)  output in x.dtype (cast on the final store)
    """
    acc = jnp.dot(a_ref[...], w_ref[...], preferred_element_type=jnp.float32)
    o_ref[...] = (acc + pos_ref[...]).astype(o_ref.dtype)


def _pick_token_tile(n_tokens, cap=512):
    """Largest divisor of n_tokens that is a multiple of 8 and <= cap.
    Falls back to the full token axis (always a legal block dim)."""
    best = None
    d = 8
    while d <= min(n_tokens, cap):
        if n_tokens % d == 0:
            best = d
        d += 8
    return best if best is not None else n_tokens


def patch_embeddings_pallas(x, weight, bias, pos_emb, patch_size,
                            compute_dtype=None):
    """x:      (B, C, H, W) NCHW (PyTorch convention)
    weight:    (dim_out, C, p, p)   (torch Conv2d layout)
    bias:      (dim_out,)
    pos_emb:   (1, n_tokens, dim_out)
    compute_dtype: optional dtype (e.g. jnp.bfloat16) for the matmul inputs.
    returns    (B, n_tokens, dim_out) in x.dtype
    """
    B, C, H, W = x.shape
    p = patch_size
    dim_out = weight.shape[0]
    gh, gw = H // p, W // p
    n_tokens = gh * gw
    K = C * p * p
    N = dim_out

    cd = compute_dtype if compute_dtype is not None else x.dtype

    # --- glue: extract non-overlapping patches in (C, ph, pw) order ---
    # Cast first so the transpose writes compute_dtype directly (fused by XLA).
    # (B, C, gh, p, gw, p) -> (B, gh, gw, C, p, p) -> (B, T, K)
    a = x.astype(cd).reshape(B, C, gh, p, gw, p).transpose(0, 2, 4, 1, 3, 5)
    a = a.reshape(B, n_tokens, K)
    # conv weight (out, in, p, p) -> (K, N), same (in, ph, pw) order
    w = weight.reshape(dim_out, K).T.astype(cd)

    # fold conv bias into the position embedding: one small (T, N) f32 table
    pos_bias = (pos_emb.reshape(n_tokens, N)
                + bias.reshape(1, N)).astype(jnp.float32)

    # --- lane-dense output: pad N up to a multiple of 128 (sliced off after) ---
    Np = max(128, pl.cdiv(N, 128) * 128)
    if Np != N:
        w = jnp.pad(w, ((0, 0), (0, Np - N)))
        pos_bias = jnp.pad(pos_bias, ((0, 0), (0, Np - N)))

    tt = _pick_token_tile(n_tokens)
    grid = (n_tokens // tt, B)   # token-outer: pos tile stays resident over B

    # --- VMEM budget (resident W + double-buffered A/out/pos), capped for v7x ---
    cd_bytes = jnp.dtype(cd).itemsize
    out_bytes = jnp.dtype(x.dtype).itemsize
    est = (2 * K * Np * cd_bytes          # weight (worst-case double buffer)
           + 2 * tt * K * cd_bytes        # A tiles
           + 2 * tt * Np * out_bytes      # output tiles
           + 2 * tt * Np * 4)             # pos tiles (f32)
    vmem_limit = int(min(max(2 * est, 8 * 1024 * 1024), 48 * 1024 * 1024))

    out = pl.pallas_call(
        _embed_kernel,
        out_shape=jax.ShapeDtypeStruct((B, n_tokens, Np), x.dtype),
        grid_spec=pltpu.PrefetchScalarGridSpec(
            num_scalar_prefetch=0,
            grid=grid,
            in_specs=[
                # A: one (tt, K) activation tile per (t, b) block
                pl.BlockSpec((pl.Squeezed(), tt, K), lambda t, b: (b, t, 0)),
                # W: full (K, Np) weight, constant index -> VMEM-resident
                pl.BlockSpec((K, Np), lambda t, b: (0, 0)),
                # pos+bias: depends only on t -> resident across the batch sweep
                pl.BlockSpec((tt, Np), lambda t, b: (t, 0)),
            ],
            out_specs=pl.BlockSpec((pl.Squeezed(), tt, Np),
                                   lambda t, b: (b, t, 0)),
        ),
        compiler_params=pltpu.CompilerParams(
            dimension_semantics=("parallel", "parallel"),
            vmem_limit_bytes=vmem_limit,
        ),
    )(a, w, pos_bias)

    if Np != N:
        out = out[..., :N]
    return out


def reference_embeddings(x, weight, bias, pos_emb, patch_size):
    """Pure-JAX reference matching the torch forward (eval mode)."""
    y = jax.lax.conv_general_dilated(
        x,
        weight,
        window_strides=(patch_size, patch_size),
        padding="VALID",
        dimension_numbers=("NCHW", "OIHW", "NCHW"),
    )
    y = y + bias.reshape(1, -1, 1, 1)
    B, C, gh, gw = y.shape
    y = y.reshape(B, C, gh * gw).transpose(0, 2, 1)  # (B, T, dim)
    return y + pos_emb


if __name__ == "__main__":
    # Small shapes consistent with the module:
    # dim=32, patch_size=4, spatial=16 -> n_tokens = (16/4)^2 = 16, batch=2
    B, dim, H, W = 2, 32, 16, 16
    patch_size = 4
    n_tokens = (H // patch_size) * (W // patch_size)

    key = jax.random.PRNGKey(0)
    kx, kw, kb, kp = jax.random.split(key, 4)

    x = jax.random.normal(kx, (B, dim, H, W), dtype=jnp.float32)
    # Conv2d(dim, dim, patch_size, stride=patch_size) parameters
    fan_in = dim * patch_size * patch_size
    bound = 1.0 / (fan_in ** 0.5)
    conv_w = jax.random.uniform(
        kw, (dim, dim, patch_size, patch_size), jnp.float32, -bound, bound
    )
    conv_b = jax.random.uniform(kb, (dim,), jnp.float32, -bound, bound)
    # position_embeddings parameter (zeros-initialized in the module; use
    # non-trivial values here to actually exercise the add path)
    pos_emb = 0.02 * jax.random.normal(kp, (1, n_tokens, dim), dtype=jnp.float32)

    ref = reference_embeddings(x, conv_w, conv_b, pos_emb, patch_size)

    # f32 path (matches torch semantics tightly)
    out = patch_embeddings_pallas(x, conv_w, conv_b, pos_emb, patch_size)
    out = jax.block_until_ready(out)
    assert out.shape == (B, n_tokens, dim), out.shape
    assert jnp.allclose(out, ref, atol=1e-4, rtol=1e-4), (
        float(jnp.max(jnp.abs(out - ref)))
    )

    # bf16 MXU fast path (production option): looser tolerance
    out_bf = patch_embeddings_pallas(
        x, conv_w, conv_b, pos_emb, patch_size, compute_dtype=jnp.bfloat16
    )
    out_bf = jax.block_until_ready(out_bf)
    assert out_bf.dtype == x.dtype
    assert jnp.allclose(out_bf, ref, atol=1e-1, rtol=1e-1), (
        float(jnp.max(jnp.abs(out_bf - ref)))
    )

    print("KERNEL_OK")
</pallas_src>

<mosaic_0001>
module attributes {stable_mosaic.version = 11 : i64} {
  func.func @_embed_kernel(%arg0: i32, %arg1: i32, %arg2: memref<1x16x512xf32, #tpu.memory_space<vmem>>, %arg3: memref<512x128xf32, #tpu.memory_space<vmem>>, %arg4: memref<16x128xf32, #tpu.memory_space<vmem>>, %arg5: memref<1x16x128xf32, #tpu.memory_space<vmem>>) attributes {dimension_semantics = [#tpu.dimension_semantics<parallel>, #tpu.dimension_semantics<parallel>], iteration_bounds = array<i64: 1, 2>, scalar_prefetch = 0 : i64, scratch_operands = 0 : i64, tpu.core_type = #tpu.core_type<tc>, window_params = [{transform_indices = @transform_0, window_bounds = array<i64: 1, 16, 512>}, {pipeline_mode = #tpu.pipeline_mode<synchronous>, transform_indices = @transform_1, window_bounds = array<i64: 512, 128>}, {transform_indices = @transform_2, window_bounds = array<i64: 16, 128>}, {transform_indices = @transform_3, window_bounds = array<i64: 1, 16, 128>}]} {
    %c0 = arith.constant 0 : index
    %c0_0 = arith.constant 0 : index
    %c0_1 = arith.constant 0 : index
    %0 = vector.load %arg2[%c0, %c0_0, %c0_1] : memref<1x16x512xf32, #tpu.memory_space<vmem>>, vector<1x16x512xf32>
    %1 = vector.shape_cast %0 : vector<1x16x512xf32> to vector<16x512xf32>
    %c0_2 = arith.constant 0 : index
    %c0_3 = arith.constant 0 : index
    %2 = vector.load %arg3[%c0_2, %c0_3] : memref<512x128xf32, #tpu.memory_space<vmem>>, vector<512x128xf32>
    %cst = arith.constant dense<0.000000e+00> : vector<16x128xf32>
    %3 = tpu.matmul %1, %2, %cst {dimension_numbers = #tpu.dot_dimension_numbers<[1], [0], [0], [1], [0, 0, 1, 1], [], []>} : vector<16x512xf32>, vector<512x128xf32>, vector<16x128xf32> -> vector<16x128xf32>
    %c0_4 = arith.constant 0 : index
    %c0_5 = arith.constant 0 : index
    %4 = vector.load %arg4[%c0_4, %c0_5] : memref<16x128xf32, #tpu.memory_space<vmem>>, vector<16x128xf32>
    %5 = arith.addf %3, %4 : vector<16x128xf32>
    %c0_6 = arith.constant 0 : index
    %c0_7 = arith.constant 0 : index
    %c0_8 = arith.constant 0 : index
    %6 = vector.load %arg5[%c0_6, %c0_7, %c0_8] : memref<1x16x128xf32, #tpu.memory_space<vmem>>, vector<1x16x128xf32>
    %7 = vector.shape_cast %6 : vector<1x16x128xf32> to vector<16x128xf32>
    %8 = vector.shape_cast %5 : vector<16x128xf32> to vector<1x16x128xf32>
    tpu.vector_store %arg5[%c0_6, %c0_7, %c0_8], %8 {strides = array<i32>} : memref<1x16x128xf32, #tpu.memory_space<vmem>>, vector<1x16x128xf32>,
    return
  }
  func.func @transform_0(%arg0: i32, %arg1: i32) -> (i32, i32, i32) {
    %c0_i32 = arith.constant 0 : i32
    %c0_i32_0 = arith.constant 0 : i32
    return %arg1, %arg0, %c0_i32 : i32, i32, i32
  }
  func.func @transform_1(%arg0: i32, %arg1: i32) -> (i32, i32) {
    %c0_i32 = arith.constant 0 : i32
    %c0_i32_0 = arith.constant 0 : i32
    %c0_i32_1 = arith.constant 0 : i32
    return %c0_i32, %c0_i32_0 : i32, i32
  }
  func.func @transform_2(%arg0: i32, %arg1: i32) -> (i32, i32) {
    %c0_i32 = arith.constant 0 : i32
    %c0_i32_0 = arith.constant 0 : i32
    return %arg0, %c0_i32 : i32, i32
  }
  func.func @transform_3(%arg0: i32, %arg1: i32) -> (i32, i32, i32) {
    %c0_i32 = arith.constant 0 : i32
    %c0_i32_0 = arith.constant 0 : i32
    return %arg1, %arg0, %c0_i32 : i32, i32, i32
  }
}

</mosaic_0001>

<bundles_post_ra>
// kernel: tpu_custom_call.1
= control target key start
LH: loop header
LB: loop body
LE: loop exit
PB: predicated region body
PF: predicated region fallthrough
CT: control target
= control target key end

     0   :  { %8 = vsyncpa [#allocation3], 0  ;;  %s1179_s0 = inlined_call_operand.hbm [shape: f32[2,16,512], index: 0, kind: input, shape index: {}]   ;;  %s1180_s1 = inlined_call_operand.hbm [shape: f32[512,128], index: 1, kind: input, shape index: {}]   ;;  %s1181_s2 = inlined_call_operand.hbm [shape: f32[16,128], index: 2, kind: input, shape index: {}]   ;;  %s1182_s3 = inlined_call_operand.hbm [shape: f32[2,16,128], index: 3, kind: output, shape index: {}]  }
   0x1   :  { %10 = vsyncpa [#allocation3 + $0x1], 0 }
   0x2   :  { %11 = vsyncpa [#allocation6], 0 }
   0x3   :  { %12 = vsyncpa [#allocation4], 0 }
   0x4   :  { %14 = vsyncpa [#allocation4 + $0x1], 0  ;;  %s980_s12 = smov 0   ;;  %s982_s13 = smov 0  }
   0x5   :  { %s984_s14 = smov 0   ;;  %s986_s15 = smov 0  }
   0x6   :  { %s988_s16 = smov 0   ;;  %s990_s17 = smov 0  }
   0x7 LB: > { %s598_s18 = sadd.s32 4294967295, %s948_s17   ;;  %s599_s19 = sadd.s32 4294967294, %s948_s17   ;;  %s948_s17 = sphi %s990_s17, %s20_s17   ;;  %s944_s16 = sphi %s988_s16, %s1202_s16   ;;  %s940_s15 = sphi %s986_s15, %s1201_s15   ;;  %s936_s14 = sphi %s984_s14, %s1200_s14   ;;  %s932_s13 = sphi %s982_s13, %s1199_s13   ;;  %s928_s12 = sphi %s980_s12, %s1198_s12  }
   0x8   : > { %p54_p0 = scmp.ne.s32.totalorder %s932_s13, %s928_s12  ;;  %p1014_p1 = scmp.eq.s32.totalorder %s598_s18, 0 }
   0x9   : > { %p1018_p2 = scmp.eq.s32.totalorder %s598_s18, 1  ;;  %p133_p3 = scmp.eq.s32.totalorder %s599_s19, 1 }
   0xa   : > { %s1186_s20 = scalar_select %p1014_p1, 1, 0 }
   0xb   : > { %p1024_p4 = por %p1014_p1, %p54_p0  ;;  %p600_p5 = scmp.ge.s32.totalorder %s948_s17, 1 }
   0xc   : > { %p1029_p6 = por %p133_p3, %p54_p0  ;;  %p140_p7 = scmp.lt.s32.totalorder %s948_s17, 3 }
   0xd   : > { %s1188_s22 = scalar_select %p1024_p4, 1, 0 }
   0xe   : > { %s1189_s23 = scalar_select %p1029_p6, 1, 0 }
   0xf   : > { %p1034_p8 = pnand %p600_p5, %p140_p7  ;;  %s950_s25 = smov [#allocation5]  }
  0x10   : > { %s152_s26 = sshll.u32 %s950_s25, 4  ;;  %s951_s28 = smov [#allocation7]   ;;  %s153_s26 = int_to_ptr.vmem [resolvable:$true] %s152_s26 }
  0x11   : > { %p707_p9 = pneg %p1034_p8  ;;  %s168_s29 = sshll.u32 %s951_s28, 4  ;;  %s169_s29 = int_to_ptr.vmem [resolvable:$true] %s168_s29 }
  0x12   : > { %s795_s30 = scalar_lea.vmem %s153_s26, 8192  ;;  %p803_p5 = scmp.lt.s32.totalorder %s153_s26, %s153_s26 }
  0x13   : > { %p1043_p11 = pnand %p707_p9, %p1014_p1  ;;  %p796_p13 = scmp.ne.s32.totalorder %s153_s26, %s795_s30 }
  0x14   : > { %p804_p7 = scmp.lt.s32.totalorder %s795_s30, %s795_s30 }
  0x15   : > { %p786_p12 = pneg %p1043_p11 }
  0x16   : > { %p805_p10 = por %p804_p7, %p803_p5 }
  0x17   : > { %p798_p0 = pnand %p796_p13, %p786_p12 }
  0x19   : > { %p799_p3 = pneg %p798_p0 }
  0x1b   : > { %p806_p9 = pnand %p805_p10, %p799_p3 }
  0x1d   : > { %809 = shalt.err (!%p806_p9)
}
  0x1e   : > { %s952_s4 = smov 128   ;;  %s953_s5 = smov 8  }
  0x1f   : > { %710 = dma.hbm_to_vmem [thread:$0]  (!%p1043_p11), %s1180_s1, 8192, %s153_s26, [#allocation6], %s952_s4, %s952_s4, %s953_s5  }
  0x20   : > { %s821_s8 = scalar_lea.vmem %s169_s29, 256  ;;  %p829_p1 = scmp.lt.s32.totalorder %s169_s29, %s169_s29 }
  0x21   : > { %p822_p6 = scmp.ne.s32.totalorder %s169_s29, %s821_s8  ;;  %p830_p4 = scmp.lt.s32.totalorder %s821_s8, %s821_s8 }
  0x23   : > { %p824_p13 = pnand %p822_p6, %p786_p12  ;;  %p831_p5 = por %p830_p4, %p829_p1 }
  0x25   : > { %p825_p0 = pneg %p824_p13 }
  0x27   : > { %p832_p10 = pnand %p831_p5, %p825_p0 }
  0x29   : > { %835 = shalt.err (!%p832_p10)
}
  0x2a   : > { %713 = dma.hbm_to_vmem [thread:$0]  (!%p1043_p11), %s1181_s2, 256, %s169_s29, [#allocation6], %s952_s4, %s952_s4, %s953_s5  }
  0x2b   : > { %s29_s11 = sadd.s32 1, %s944_s16  ;;  %s41_s18 = sadd.s32 1, %s936_s14 }
  0x2c   : > { %p30_p1 = scmp.ge.s32.totalorder %s29_s11, 2  ;;  %p48_p4 = scmp.ne.s32.totalorder %s936_s14, %s932_s13 }
  0x2d   : > { %p49_p6 = scmp.eq.s32.totalorder %s948_s17, 0  ;;  %p724_p12 = scmp.lt.s32.totalorder %s948_s17, 2 }
  0x2e   : > { %s1204_s11 = smov (%p30_p1, %s29_s11), 0  ;;  %p1075_p7 = por %p1018_p2, %p48_p4 }
  0x2f   : > { %p50_p3 = por %p49_p6, %p48_p4  ;;  %s36_s25 = ssub.s32 %s944_s16, %s1204_s11 }
  0x30   : > { %s182_s26 = sand.u32 1, %s936_s14   ;;  %p39_p9 = scmp.eq.s32.totalorder %s36_s25, 0 }
  0x31   : > { %s604_s27 = sshll.u32 %s182_s26, 6  ;;  %s617_s28 = sshll.u32 %s944_s16, 10 }
  0x32   : > { %s1084_s29 = scalar_select %p39_p9, %s936_s14, %s41_s18  }
  0x33   : > { %s195_s5 = scalar_lea.hbm %s1179_s0, %s617_s28  ;;  %s186_s6 = scalar_lea.vmem [#allocation2], %s604_s27 }
  0x34   : > { %s196_s7 = sshll.u32 %s186_s6, 4  ;;  %p1091_p11 = pnand %p724_p12, %p50_p3  ;;  %s197_s7 = int_to_ptr.vmem [resolvable:$true] %s196_s7 }
  0x35   : > { %s183_s8 = scalar_lea.sflag [#allocation3], %s182_s26  ;;  %s849_s9 = scalar_lea.vmem %s197_s7, 1024 }
  0x36   : > { %p838_p2 = pneg %p1091_p11  ;;  %p850_p13 = scmp.ne.s32.totalorder %s197_s7, %s849_s9 }
  0x37   : > { %s954_s10 = smov [#allocation2]  }
  0x38   : > { %p852_p0 = pnand %p850_p13, %p838_p2  ;;  %s854_s18 = sshll.u32 %s954_s10, 4  ;;  %s855_s18 = int_to_ptr.vmem [resolvable:$false] %s854_s18 }
  0x39   : > { %s856_s25 = scalar_lea.vmem %s855_s18, 2048  ;;  %p857_p10 = scmp.lt.s32.totalorder %s197_s7, %s855_s18 }
  0x3a   : > { %p853_p5 = pneg %p852_p0  ;;  %p858_p1 = scmp.lt.s32.totalorder %s856_s25, %s849_s9 }
  0x3c   : > { %p859_p4 = por %p858_p1, %p857_p10 }
  0x3e   : > { %p860_p6 = pnand %p859_p4, %p853_p5 }
  0x40   : > { %863 = shalt.err (!%p860_p6)
}
  0x41   : > { %s955_s27 = smov 512   ;;  %s956_s28 = smov 32  }
  0x42   : > { %717 = dma.hbm_to_vmem [thread:$0]  (!%p1091_p11), %s195_s5, 1024, %s197_s7, %s183_s8, %s955_s27, %s955_s27, %s956_s28  }
  0x43   : > { %208 = sbr.rel (%p1034_p8) target bundleno = 330 (0x14a), region = 32  ;;  %s1102_s26 = sand.u32 (!%p1034_p8), 1, %s932_s13  }
  0x44   : > { %s608_s30 = sshll.u32 (!%p1034_p8), %s1102_s26, 6  ;;  %s211_s4 = scalar_lea.sflag (!%p1034_p8), [#allocation3], %s1102_s26 }
  0x45   : > { %s1106_s6 = scalar_lea.vmem (!%p1034_p8), [#allocation2], %s608_s30  ;;  %p1194_p12 = scmp.ne.s32.totalorder (!%p1034_p8), %s1188_s22, 0 }
  0x48   : > { %915 = dma.done.wait (%p1194_p12), %s211_s4, 1024  }
  0x49   : > { %917 = vsyncadd (%p1194_p12), %s211_s4, 4294966272  ;;  %p1195_p3 = scmp.ne.s32.totalorder %s1186_s20, 0 }
  0x4b   : > { %919 = dma.done.wait (%p1195_p3), [#allocation6], 8448  }
  0x4c   : > { %921 = vsyncadd (%p1195_p3), [#allocation6], 4294958848  ;;  %v287_v0 = vld [vmem:[#allocation5 + $0xf8] sm:$0xff]  ;;  %v286_v4 = vld [vmem:[#allocation5 + $0xf0] sm:$0xff]  ;;  %s611_s20 = sshll.u32 %s1102_s26, 4  ;;  %s618_s5 = sshll.u32 %s940_s15, 8 }
  0x4d   : > { %v319_v1 = vld [vmem:[#allocation5 + $0x1f8] sm:$0xff]  ;;  %619 = vmatprep.subr.mxu0 %v287_v0  ;;  %v318_v5 = vld [vmem:[#allocation5 + $0x1f0] sm:$0xff]  ;;  %v285_v8 = vld [vmem:[#allocation5 + $0xe8] sm:$0xff]  ;;  %s244_s22 = scalar_lea.vmem [#allocation8], %s611_s20  ;;  %s1131_s8 = scalar_lea.hbm %s1182_s3, %s618_s5 }
  0x4e   : > { %v271_v2 = vld [vmem:[#allocation5 + $0x78] sm:$0xff]  ;;  %657 = vmatprep.subr.mxu1 %v319_v1  ;;  %v270_v6 = vld [vmem:[#allocation5 + $0x70] sm:$0xff]  ;;  %v317_v9 = vld [vmem:[#allocation5 + $0x1e8] sm:$0xff]  ;;  %s490_s24 = sshll.u32 %s244_s22, 4  ;;  %s475_s9 = scalar_lea.sflag [#allocation4], %s1102_s26  ;;  %s1126_s24 = int_to_ptr.vmem [resolvable:$true] %s490_s24 }
  0x4f   : > { %v303_v3 = vld [vmem:[#allocation5 + $0x178] sm:$0xff]  ;;  %620 = vmatpush3.msra.mxu0 %v271_v2  ;;  %v302_v7 = vld [vmem:[#allocation5 + $0x170] sm:$0xff]  ;;  %v269_v10 = vld [vmem:[#allocation5 + $0x68] sm:$0xff]  ;;  %s864_s10 = scalar_lea.vmem %s1126_s24, 256  ;;  %s957_s15 = smov [#allocation8]  }
  0x50   : > { %658 = vmatpush3.msra.mxu1 %v303_v3  ;;  %621 = vmatprep.subr.mxu0 %v286_v4  ;;  %v301_v11 = vld [vmem:[#allocation5 + $0x168] sm:$0xff]  ;;  %v284_v12 = vld [vmem:[#allocation5 + $0xe0] sm:$0xff]  ;;  %v283_v16 = vld [vmem:[#allocation5 + $0xd8] sm:$0xff]  ;;  %p865_p8 = scmp.ne.s32.totalorder %s1126_s24, %s864_s10  ;;  %s868_s18 = sshll.u32 %s957_s15, 4  ;;  %s869_s18 = int_to_ptr.vmem [resolvable:$false] %s868_s18 }
  0x51   : > { %659 = vmatprep.subr.mxu1 %v318_v5  ;;  %622 = vmatpush3.msra.mxu0 %v270_v6  ;;  %v316_v13 = vld [vmem:[#allocation5 + $0x1e0] sm:$0xff]  ;;  %v315_v17 = vld [vmem:[#allocation5 + $0x1d8] sm:$0xff]  ;;  %v282_v20 = vld [vmem:[#allocation5 + $0xd0] sm:$0xff]  ;;  %s870_s25 = scalar_lea.vmem %s869_s18, 512  ;;  %p871_p2 = scmp.lt.s32.totalorder %s1126_s24, %s869_s18 }
  0x52   : > { %660 = vmatpush3.msra.mxu1 %v302_v7  ;;  %623 = vmatprep.subr.mxu0 %v285_v8  ;;  %v268_v14 = vld [vmem:[#allocation5 + $0x60] sm:$0xff]  ;;  %v267_v18 = vld [vmem:[#allocation5 + $0x58] sm:$0xff]  ;;  %v314_v21 = vld [vmem:[#allocation5 + $0x1d0] sm:$0xff]  ;;  %p866_p9 = pnand %p865_p8, %p1075_p7  ;;  %p872_p13 = scmp.lt.s32.totalorder %s870_s25, %s864_s10 }
  0x53   : > { %661 = vmatprep.subr.mxu1 %v317_v9  ;;  %v300_v15 = vld [vmem:[#allocation5 + $0x160] sm:$0xff]  ;;  %624 = vmatpush3.msra.mxu0 %v269_v10  ;;  %v299_v19 = vld [vmem:[#allocation5 + $0x158] sm:$0xff]  ;;  %v266_v22 = vld [vmem:[#allocation5 + $0x50] sm:$0xff] }
  0x54   : > { %662 = vmatpush3.msra.mxu1 %v301_v11  ;;  %625 = vmatprep.subr.mxu0 %v284_v12  ;;  %v298_v23 = vld [vmem:[#allocation5 + $0x150] sm:$0xff]  ;;  %v281_v24 = vld [vmem:[#allocation5 + $0xc8] sm:$0xff]  ;;  %v280_v28 = vld [vmem:[#allocation5 + $0xc0] sm:$0xff]  ;;  %p867_p11 = pneg %p866_p9  ;;  %p873_p0 = por %p872_p13, %p871_p2 }
  0x55   : > { %663 = vmatprep.subr.mxu1 %v316_v13  ;;  %626 = vmatpush3.msra.mxu0 %v268_v14  ;;  %v313_v25 = vld [vmem:[#allocation5 + $0x1c8] sm:$0xff]  ;;  %v312_v29 = vld [vmem:[#allocation5 + $0x1c0] sm:$0xff]  ;;  %v279_v32 = vld [vmem:[#allocation5 + $0xb8] sm:$0xff] }
  0x56   : > { %664 = vmatpush3.msra.mxu1 %v300_v15  ;;  %627 = vmatprep.subr.mxu0 %v283_v16  ;;  %v265_v26 = vld [vmem:[#allocation5 + $0x48] sm:$0xff]  ;;  %v264_v30 = vld [vmem:[#allocation5 + $0x40] sm:$0xff]  ;;  %v311_v33 = vld [vmem:[#allocation5 + $0x1b8] sm:$0xff]  ;;  %p874_p5 = pnand %p873_p0, %p867_p11 }
  0x57   : > { %665 = vmatprep.subr.mxu1 %v315_v17  ;;  %628 = vmatpush3.msra.mxu0 %v267_v18  ;;  %v297_v27 = vld [vmem:[#allocation5 + $0x148] sm:$0xff]  ;;  %v296_v31 = vld [vmem:[#allocation5 + $0x140] sm:$0xff]  ;;  %v263_v34 = vld [vmem:[#allocation5 + $0x38] sm:$0xff] }
  0x58   : > { %666 = vmatpush3.msra.mxu1 %v299_v19  ;;  %629 = vmatprep.subr.mxu0 %v282_v20  ;;  %v295_v35 = vld [vmem:[#allocation5 + $0x138] sm:$0xff]  ;;  %v278_v36 = vld [vmem:[#allocation5 + $0xb0] sm:$0xff]  ;;  %v277_v40 = vld [vmem:[#allocation5 + $0xa8] sm:$0xff] }
  0x59   : > { %667 = vmatprep.subr.mxu1 %v314_v21  ;;  %630 = vmatpush3.msra.mxu0 %v266_v22  ;;  %v310_v37 = vld [vmem:[#allocation5 + $0x1b0] sm:$0xff]  ;;  %v309_v41 = vld [vmem:[#allocation5 + $0x1a8] sm:$0xff]  ;;  %v276_v44 = vld [vmem:[#allocation5 + $0xa0] sm:$0xff] }
  0x5a   : > { %668 = vmatpush3.msra.mxu1 %v298_v23  ;;  %631 = vmatprep.subr.mxu0 %v281_v24  ;;  %v262_v38 = vld [vmem:[#allocation5 + $0x30] sm:$0xff]  ;;  %v261_v42 = vld [vmem:[#allocation5 + $0x28] sm:$0xff]  ;;  %v308_v45 = vld [vmem:[#allocation5 + $0x1a0] sm:$0xff] }
  0x5b   : > { %669 = vmatprep.subr.mxu1 %v313_v25  ;;  %632 = vmatpush3.msra.mxu0 %v265_v26  ;;  %v294_v39 = vld [vmem:[#allocation5 + $0x130] sm:$0xff]  ;;  %v293_v43 = vld [vmem:[#allocation5 + $0x128] sm:$0xff]  ;;  %v260_v46 = vld [vmem:[#allocation5 + $0x20] sm:$0xff] }
  0x5c   : > { %670 = vmatpush3.msra.mxu1 %v297_v27  ;;  %633 = vmatprep.subr.mxu0 %v280_v28  ;;  %v292_v47 = vld [vmem:[#allocation5 + $0x120] sm:$0xff]  ;;  %v275_v48 = vld [vmem:[#allocation5 + $0x98] sm:$0xff]  ;;  %v274_v52 = vld [vmem:[#allocation5 + $0x90] sm:$0xff] }
  0x5d   : > { %671 = vmatprep.subr.mxu1 %v312_v29  ;;  %634 = vmatpush3.msra.mxu0 %v264_v30  ;;  %v307_v49 = vld [vmem:[#allocation5 + $0x198] sm:$0xff]  ;;  %v306_v53 = vld [vmem:[#allocation5 + $0x190] sm:$0xff]  ;;  %v273_v56 = vld [vmem:[#allocation5 + $0x88] sm:$0xff] }
  0x5e   : > { %672 = vmatpush3.msra.mxu1 %v296_v31  ;;  %635 = vmatprep.subr.mxu0 %v279_v32  ;;  %v259_v50 = vld [vmem:[#allocation5 + $0x18] sm:$0xff]  ;;  %v258_v54 = vld [vmem:[#allocation5 + $0x10] sm:$0xff]  ;;  %v305_v57 = vld [vmem:[#allocation5 + $0x188] sm:$0xff] }
  0x5f   : > { %673 = vmatprep.subr.mxu1 %v311_v33  ;;  %636 = vmatpush3.msra.mxu0 %v263_v34  ;;  %v291_v51 = vld [vmem:[#allocation5 + $0x118] sm:$0xff]  ;;  %v290_v55 = vld [vmem:[#allocation5 + $0x110] sm:$0xff]  ;;  %v257_v58 = vld [vmem:[#allocation5 + $0x8] sm:$0xff] }
  0x60   : > { %674 = vmatpush3.msra.mxu1 %v295_v35  ;;  %637 = vmatprep.subr.mxu0 %v278_v36  ;;  %v289_v59 = vld [vmem:[#allocation5 + $0x108] sm:$0xff]  ;;  %v272_v60 = vld [vmem:[#allocation5 + $0x80] sm:$0xff]  ;;  %v251_v1 = vld [vmem:[%s1106_s6 + $0x18] sm:$0xff] }
  0x61   : > { %675 = vmatprep.subr.mxu1 %v310_v37  ;;  %638 = vmatpush3.msra.mxu0 %v262_v38  ;;  %v304_v61 = vld [vmem:[#allocation5 + $0x180] sm:$0xff]  ;;  %v249_v63 = vld [vmem:[%s1106_s6 + $0x8] sm:$0xff]  ;;  %v250_v3 = vld [vmem:[%s1106_s6 + $0x10] sm:$0xff] }
  0x62   : > { %676 = vmatpush3.msra.mxu1 %v294_v39  ;;  %639 = vmatprep.subr.mxu0 %v277_v40  ;;  %v256_v62 = vld [vmem:[#allocation5] sm:$0xff]  ;;  %v253_v4 = vld [vmem:[%s1106_s6 + $0x28] sm:$0xff]  ;;  %v255_v5 = vld [vmem:[%s1106_s6 + $0x38] sm:$0xff] }
  0x63   : > { %677 = vmatprep.subr.mxu1 %v309_v41  ;;  %640 = vmatpush3.msra.mxu0 %v261_v42  ;;  %v288_v0 = vld [vmem:[#allocation5 + $0x100] sm:$0xff]  ;;  %v254_v7 = vld [vmem:[%s1106_s6 + $0x30] sm:$0xff]  ;;  %v321_v18 = vld [vmem:[#allocation7 + $0x8] sm:$0xff] }
  0x64   : > { %678 = vmatpush3.msra.mxu1 %v293_v43  ;;  %641 = vmatprep.subr.mxu0 %v276_v44  ;;  %v248_v2 = vld [vmem:[%s1106_s6] sm:$0xff] }
  0x65   : > { %679 = vmatprep.subr.mxu1 %v308_v45  ;;  %642 = vmatpush3.msra.mxu0 %v260_v46  ;;  %v252_v6 = vld [vmem:[%s1106_s6 + $0x20] sm:$0xff] }
  0x66   : > { %680 = vmatpush3.msra.mxu1 %v292_v47  ;;  %643 = vmatprep.subr.mxu0 %v275_v48  ;;  %v320_v10 = vld [vmem:[#allocation7] sm:$0xff] }
  0x67   : > { %681 = vmatprep.subr.mxu1 %v307_v49  ;;  %644 = vmatpush3.msra.mxu0 %v259_v50 }
  0x68   : > { %682 = vmatpush3.msra.mxu1 %v291_v51  ;;  %645 = vmatprep.subr.mxu0 %v274_v52 }
  0x69   : > { %683 = vmatprep.subr.mxu1 %v306_v53  ;;  %646 = vmatpush3.msra.mxu0 %v258_v54 }
  0x6a   : > { %684 = vmatpush3.msra.mxu1 %v290_v55  ;;  %647 = vmatprep.subr.mxu0 %v273_v56 }
  0x6b   : > { %685 = vmatprep.subr.mxu1 %v305_v57  ;;  %648 = vmatpush3.msra.mxu0 %v257_v58 }
  0x6c   : > { %686 = vmatpush3.msra.mxu1 %v289_v59  ;;  %649 = vmatprep.subr.mxu0 %v272_v60 }
  0x6d   : > { %687 = vmatprep.subr.mxu1 %v304_v61  ;;  %650 = vmatpush3.msra.mxu0 %v256_v62 }
  0x6e   : > { %386 = vmatprep.mubr.f32.mxu0 %v249_v63  ;;  %688 = vmatpush3.msra.mxu1 %v288_v0 }
  0x6f   : > { %461 = vmatprep.mubr.f32.mxu1 %v251_v1  ;;  %387 = vmatmul.mubr.f32.vlgmr.msra.gmra.mxu0 %v248_v2 }
  0x70   : > { %462 = vmatmul.mubr.f32.vlgmr.msra.gmra.mxu1 %v250_v3  ;;  %391 = vmatprep.mubr.f32.mxu0 %v253_v4 }
  0x71   : > { %466 = vmatprep.mubr.f32.mxu1 %v255_v5 }
  0x73   : > { %392 = vmatmul.mubr.f32.gmra.mxu0 %v252_v6 }
  0x74   : > { %467 = vmatmul.mubr.f32.gmra.mxu1 %v254_v7 }
 0x12f   : > { %v651_v8 = vpop.f32.mrf.mxu0 }
 0x130   : > { %v689_v9 = vpop.f32.mrf.mxu1 }
 0x131   : > { %v652_v11 = vpop.f32.mrf.mxu0 }
 0x132   : > { %v690_v12 = vpop.f32.mrf.mxu1  ;;  %v653_v13 = vadd.f32 %v652_v11, %v651_v8 }
 0x133   : > { %v654_v14 = vpop.f32.mrf.mxu0  ;;  %v691_v17 = vadd.f32 %v690_v12, %v689_v9 }
 0x134   : > { %v692_v15 = vpop.f32.mrf.mxu1  ;;  %v389_v16 = vadd.f32 %v653_v13, %v320_v10 }
 0x135   : > { %v655_v19 = vpop.f32.mrf.mxu0 }
 0x136   : > { %v693_v20 = vpop.f32.mrf.mxu1  ;;  %v464_v21 = vadd.f32 %v691_v17, %v389_v16  ;;  %v656_v22 = vadd.f32 %v655_v19, %v654_v14 }
 0x137   : > { %v694_v24 = vadd.f32 %v693_v20, %v692_v15 }
 0x138   : > { %472 = vst [vmem:[%s244_s22] sm:$0xff] %v464_v21  ;;  %v394_v23 = vadd.f32 %v656_v22, %v321_v18 }
 0x13a   : > { %v469_v25 = vadd.f32 %v694_v24, %v394_v23 }
 0x13c   : > { %473 = vst [vmem:[%s244_s22 + $0x8] sm:$0xff] %v469_v25 }
 0x13d   : > { %877 = shalt.err (!%p874_p5)
}
 0x13e   : > { %s878_s27 = scalar_lea.hbm %s1131_s8, 256  ;;  %s882_s4 = scalar_lea.hbm %s1182_s3, 512 }
 0x13f   : > { %p879_p10 = scmp.ne.s32.totalorder %s1131_s8, %s878_s27  ;;  %p883_p6 = scmp.lt.s32.totalorder %s1131_s8, %s1182_s3 }
 0x140   : > { %p884_p12 = scmp.lt.s32.totalorder %s882_s4, %s878_s27 }
 0x141   : > { %p880_p1 = pnand %p879_p10, %p1075_p7 }
 0x142   : > { %p885_p3 = por %p884_p12, %p883_p6 }
 0x143   : > { %p881_p4 = pneg %p880_p1 }
 0x145   : > { %p886_p8 = pnand %p885_p3, %p881_p4 }
 0x147   : > { %889 = shalt.err (!%p886_p8)
}
 0x148   : > { %s958_s22 = smov 128   ;;  %s959_s5 = smov 8  }
 0x149   : > { %705 = dma.vmem_to_hbm [thread:$0]  (%p1075_p7), %s1126_s24, 256, %s1131_s8, %s475_s9, %s958_s22, %s958_s22, %s959_s5  }
 0x14a PF: > { %s505_s7 = sand.u32 1, %s928_s12   ;;  %p1196_p9 = scmp.ne.s32.totalorder %s1189_s23, 0 }
 0x14b   : > { %p1197_p11 = scmp.ge.s32.totalorder %s948_s17, 2  ;;  %s506_s21 = scalar_lea.sflag [#allocation4], %s505_s7 }
 0x14d   : > { %p719_p2 = pnand %p1197_p11, %p1196_p9 }
 0x14f   : > { %p720_p13 = pneg %p719_p2 }
 0x151   : > { %923 = dma.done.wait (%p720_p13), %s506_s21, 256  }
 0x152   : > { %925 = vsyncadd (%p720_p13), %s506_s21, 4294967040  ;;  %s20_s17 = sadd.s32 1, %s948_s17   ;;  %s1198_s12 = smov %s932_s13 }
 0x153   : > { %p17_p0 = scmp.ge.s32.totalorder %s20_s17, 4   ;;  %s1199_s13 = smov %s936_s14 }
 0x154   : > { %s1200_s14 = smov %s1084_s29  ;;  %s1201_s15 = smov %s944_s16 }
 0x155   : > { %s1202_s16 = smov %s1204_s11  ;;  %19 = sbr.rel (!%p17_p0) target bundleno = 7 (0x7), region = 86 }
 0x15a   :  { %511 = vsyncpa [#allocation3], 1 }
 0x15b   :  { %513 = vsyncpa [#allocation3 + $0x1], 1 }
 0x15c   :  { %514 = vsyncpa [#allocation6], 1 }
 0x15d   :  { %515 = vsyncpa [#allocation4], 1 }
 0x15e   :  { %517 = vsyncpa [#allocation4 + $0x1], 1 }

</bundles_post_ra>
